<compile_context>
chip_gen: v6e
topology: v6e:2x2x1
jax: 0.10.0
libtpu: 0.0.40
codegen_flags: <defaults>
</compile_context>

<pallas_src>
import jax
import jax.numpy as jnp
from jax import lax
from jax.experimental import pallas as pl
from jax.experimental.pallas import tpu as pltpu


def _make_mlp_kernel(num_layers, negative_slope, use_sigmoid, sigmoid_max, compute_dtype):
    """Pallas kernel computing the full MLP for one batch tile.

    refs = (x_ref, w0, b0, ..., w_{L-1}, b_{L-1}, out_ref)
      x_ref:   (tile_b, in_dim)  native dtype (cast in VMEM)
      w_i:     (out_i, in_i)     torch (out, in) layout, compute_dtype
      b_i:     (out_i, 1)        float32 (broadcasts over the tile_b lane axis)
      out_ref: (1, tile_b)       float32, lane-dense row
    """

    def kernel(*refs):
        x_ref = refs[0]
        params = refs[1:1 + 2 * num_layers]
        o_ref = refs[-1]

        # (tile_b, in_dim): batch-major only for the very first contraction.
        z = x_ref[...].astype(compute_dtype)
        for i in range(num_layers):
            w = params[2 * i][...].astype(compute_dtype)      # (out_i, in_i)
            b = params[2 * i + 1][...].astype(jnp.float32)    # (out_i, 1)
            if i == 0:
                # (out0, in) . (tile_b, in), contracted on 'in' -> (out0, tile_b)
                z = lax.dot_general(w, z, (((1,), (1,)), ((), ())),
                                    preferred_element_type=jnp.float32)
            else:
                # (out_i, in_i) . (in_i, tile_b) -> (out_i, tile_b), lane-dense
                z = jnp.dot(w, z, preferred_element_type=jnp.float32)
            z = z + b
            if i < num_layers - 1:
                # LeakyReLU in f32 (torch default negative_slope = 0.01)
                z = jnp.where(z > 0, z, negative_slope * z)
                z = z.astype(compute_dtype)

        if use_sigmoid:
            z = jax.nn.sigmoid(z) * sigmoid_max
        else:
            z = jax.nn.softplus(z)
        o_ref[...] = z.astype(o_ref.dtype)                    # (1, tile_b)

    return kernel


def nonneg_nn_forward(x, weights, biases, *, use_sigmoid=True, sigmoid_max=1.0,
                      negative_slope=0.01, tile_b=2048, compute_dtype=jnp.float32,
                      core_parallel=False, vmem_limit_bytes=None):
    """
    x:       (B, input_dim) array
    weights: list of torch-layout (out_i, in_i) arrays, last has out = 1
    biases:  list of (out_i,) arrays
    returns: (B, 1) float32 in (0, sigmoid_max) if use_sigmoid else (0, inf)
    """
    B, in_dim = x.shape
    num_layers = len(weights)
    assert weights[-1].shape[0] == 1, "nonnegNN output dim must be 1"
    assert tile_b % 128 == 0, "tile_b must be a multiple of 128 (lane-dense output stores)"

    num_tiles = pl.cdiv(B, tile_b)   # ragged last tile handled by Pallas (no pad copy)

    # Parameters are KB-scale: cast once in the wrapper, keep whole-array resident in
    # VMEM (constant block index -> no per-step DMA). Biases as (out, 1) columns so
    # they broadcast over the tile_b lane axis.
    params = []
    for w, b in zip(weights, biases):
        params.append(jnp.asarray(w).astype(compute_dtype))
        params.append(jnp.asarray(b).reshape(-1, 1).astype(jnp.float32))

    resident = pl.BlockSpec(memory_space=pltpu.MemorySpace.VMEM)
    in_specs = [pl.BlockSpec((tile_b, in_dim), lambda i: (i, 0))]
    in_specs += [resident] * (2 * num_layers)
    out_specs = pl.BlockSpec((1, tile_b), lambda i: (0, i))

    kernel = _make_mlp_kernel(num_layers, negative_slope, use_sigmoid,
                              sigmoid_max, compute_dtype)

    batch_sem = pltpu.CORE_PARALLEL if core_parallel else "parallel"

    out_row = pl.pallas_call(
        kernel,
        out_shape=jax.ShapeDtypeStruct((1, B), jnp.float32),
        grid_spec=pltpu.PrefetchScalarGridSpec(
            num_scalar_prefetch=0,
            grid=(num_tiles,),
            in_specs=in_specs,
            out_specs=out_specs,
        ),
        compiler_params=pltpu.CompilerParams(
            dimension_semantics=(batch_sem,),
            vmem_limit_bytes=vmem_limit_bytes,   # not needed at these sizes
        ),
    )(x, *params)

    return out_row.reshape(B, 1)


def init_params(key, input_dim, hidden_units):
    """PyTorch-Linear-style init, torch (out, in) weight layout, (out,) biases."""
    dims = [input_dim] + list(hidden_units) + [1]
    weights, biases = [], []
    for din, dout in zip(dims[:-1], dims[1:]):
        key, kw, kb = jax.random.split(key, 3)
        bound = 1.0 / (din ** 0.5)
        weights.append(jax.random.uniform(kw, (dout, din), jnp.float32, -bound, bound))
        biases.append(jax.random.uniform(kb, (dout,), jnp.float32, -bound, bound))
    return weights, biases


def reference_forward(x, weights, biases, *, use_sigmoid=True, sigmoid_max=1.0,
                      negative_slope=0.01, compute_dtype=jnp.float32):
    """Pure-JAX reference mirroring the kernel's dtype choices."""
    z = x
    n = len(weights)
    for i, (w, b) in enumerate(zip(weights, biases)):
        z = jnp.dot(z.astype(compute_dtype), w.astype(compute_dtype).T,
                    preferred_element_type=jnp.float32) + b.astype(jnp.float32)
        if i < n - 1:
            z = jnp.where(z > 0, z, negative_slope * z)
    if use_sigmoid:
        z = jax.nn.sigmoid(z) * sigmoid_max
    else:
        z = jax.nn.softplus(z)
    return z


if __name__ == "__main__":
    key = jax.random.PRNGKey(0)
    kx, kp = jax.random.split(key)

    input_dim = 16
    hidden_units = [32, 32]
    batch = 1000            # not a multiple of tile_b -> exercises the ragged last tile
    sigmoid_max = 1.0

    x = jax.random.normal(kx, (batch, input_dim), jnp.float32)
    weights, biases = init_params(kp, input_dim, hidden_units)

    # f32, multi-tile grid (3 full tiles + 1 ragged): matches torch module numerics.
    out = nonneg_nn_forward(x, weights, biases, use_sigmoid=True,
                            sigmoid_max=sigmoid_max, tile_b=256)
    out = jax.block_until_ready(out)
    ref = reference_forward(x, weights, biases, use_sigmoid=True, sigmoid_max=sigmoid_max)
    assert out.shape == (batch, 1)
    assert jnp.allclose(out, ref, atol=1e-5, rtol=1e-5), "f32 mismatch vs JAX reference"
    assert bool(jnp.all(out >= 0)) and bool(jnp.all(out <= sigmoid_max))

    # Default tile_b (2048): single ragged-tile path.
    out_big = nonneg_nn_forward(x, weights, biases, use_sigmoid=True,
                                sigmoid_max=sigmoid_max)
    out_big = jax.block_until_ready(out_big)
    assert jnp.allclose(out_big, ref, atol=1e-5, rtol=1e-5), "big-tile mismatch"

    # Softplus output head.
    out_sp = nonneg_nn_forward(x, weights, biases, use_sigmoid=False, tile_b=256)
    out_sp = jax.block_until_ready(out_sp)
    ref_sp = reference_forward(x, weights, biases, use_sigmoid=False)
    assert jnp.allclose(out_sp, ref_sp, atol=1e-5, rtol=1e-5), "softplus mismatch"
    assert bool(jnp.all(out_sp >= 0))

    # Optional bf16 matmul-operand path (f32 accumulation). Only a genuine HBM win if x
    # is already stored in bf16 upstream; numerics intentionally diverge from torch f32.
    out_bf16 = nonneg_nn_forward(x, weights, biases, use_sigmoid=True,
                                 sigmoid_max=sigmoid_max, tile_b=256,
                                 compute_dtype=jnp.bfloat16)
    out_bf16 = jax.block_until_ready(out_bf16)
    ref_bf16 = reference_forward(x, weights, biases, use_sigmoid=True,
                                 sigmoid_max=sigmoid_max, compute_dtype=jnp.bfloat16)
    assert jnp.allclose(out_bf16, ref_bf16, atol=5e-3, rtol=5e-3), "bf16 mismatch"

    print("KERNEL_OK")
</pallas_src>

<mosaic_0001>
module attributes {stable_mosaic.version = 11 : i64} {
  func.func @kernel(%arg0: i32, %arg1: memref<256x16xf32, #tpu.memory_space<vmem>>, %arg2: memref<32x16xf32, #tpu.memory_space<vmem>>, %arg3: memref<32x1xf32, #tpu.memory_space<vmem>>, %arg4: memref<32x32xf32, #tpu.memory_space<vmem>>, %arg5: memref<32x1xf32, #tpu.memory_space<vmem>>, %arg6: memref<1x32xf32, #tpu.memory_space<vmem>>, %arg7: memref<1x1xf32, #tpu.memory_space<vmem>>, %arg8: memref<1x256xf32, #tpu.memory_space<vmem>>) attributes {dimension_semantics = [#tpu.dimension_semantics<parallel>], iteration_bounds = array<i64: 4>, scalar_prefetch = 0 : i64, scratch_operands = 0 : i64, tpu.core_type = #tpu.core_type<tc>, window_params = [{transform_indices = @transform_0, window_bounds = array<i64: 256, 16>}, {pipeline_mode = #tpu.pipeline_mode<synchronous>, transform_indices = @transform_1, window_bounds = array<i64: 32, 16>}, {pipeline_mode = #tpu.pipeline_mode<synchronous>, transform_indices = @transform_2, window_bounds = array<i64: 32, 1>}, {pipeline_mode = #tpu.pipeline_mode<synchronous>, transform_indices = @transform_3, window_bounds = array<i64: 32, 32>}, {pipeline_mode = #tpu.pipeline_mode<synchronous>, transform_indices = @transform_4, window_bounds = array<i64: 32, 1>}, {pipeline_mode = #tpu.pipeline_mode<synchronous>, transform_indices = @transform_5, window_bounds = array<i64: 1, 32>}, {pipeline_mode = #tpu.pipeline_mode<synchronous>, transform_indices = @transform_6, window_bounds = array<i64: 1, 1>}, {transform_indices = @transform_7, window_bounds = array<i64: 1, 256>}]} {
    %c0 = arith.constant 0 : index
    %c0_0 = arith.constant 0 : index
    %0 = vector.load %arg1[%c0, %c0_0] : memref<256x16xf32, #tpu.memory_space<vmem>>, vector<256x16xf32>
    %c0_1 = arith.constant 0 : index
    %c0_2 = arith.constant 0 : index
    %1 = vector.load %arg2[%c0_1, %c0_2] : memref<32x16xf32, #tpu.memory_space<vmem>>, vector<32x16xf32>
    %c0_3 = arith.constant 0 : index
    %c0_4 = arith.constant 0 : index
    %2 = vector.load %arg3[%c0_3, %c0_4] : memref<32x1xf32, #tpu.memory_space<vmem>>, vector<32x1xf32>
    %cst = arith.constant dense<0.000000e+00> : vector<32x256xf32>
    %3 = tpu.matmul %1, %0, %cst {dimension_numbers = #tpu.dot_dimension_numbers<[1], [1], [0], [0], [0, 0, 1, 0], [], []>} : vector<32x16xf32>, vector<256x16xf32>, vector<32x256xf32> -> vector<32x256xf32>
    %4 = vector.broadcast %2 : vector<32x1xf32> to vector<32x256xf32>
    %5 = arith.addf %3, %4 : vector<32x256xf32>
    %cst_5 = arith.constant 0.000000e+00 : f32
    %6 = vector.broadcast %cst_5 : f32 to vector<32x256xf32>
    %7 = arith.cmpf ogt, %5, %6 : vector<32x256xf32>
    %cst_6 = arith.constant 0.00999999977 : f32
    %8 = vector.broadcast %cst_6 : f32 to vector<32x256xf32>
    %9 = arith.mulf %8, %5 : vector<32x256xf32>
    %10 = arith.select %7, %5, %9 : vector<32x256xi1>, vector<32x256xf32>
    %c0_7 = arith.constant 0 : index
    %c0_8 = arith.constant 0 : index
    %11 = vector.load %arg4[%c0_7, %c0_8] : memref<32x32xf32, #tpu.memory_space<vmem>>, vector<32x32xf32>
    %c0_9 = arith.constant 0 : index
    %c0_10 = arith.constant 0 : index
    %12 = vector.load %arg5[%c0_9, %c0_10] : memref<32x1xf32, #tpu.memory_space<vmem>>, vector<32x1xf32>
    %cst_11 = arith.constant dense<0.000000e+00> : vector<32x256xf32>
    %13 = tpu.matmul %11, %10, %cst_11 {dimension_numbers = #tpu.dot_dimension_numbers<[1], [0], [0], [1], [0, 0, 1, 1], [], []>} : vector<32x32xf32>, vector<32x256xf32>, vector<32x256xf32> -> vector<32x256xf32>
    %14 = vector.broadcast %12 : vector<32x1xf32> to vector<32x256xf32>
    %15 = arith.addf %13, %14 : vector<32x256xf32>
    %cst_12 = arith.constant 0.000000e+00 : f32
    %16 = vector.broadcast %cst_12 : f32 to vector<32x256xf32>
    %17 = arith.cmpf ogt, %15, %16 : vector<32x256xf32>
    %cst_13 = arith.constant 0.00999999977 : f32
    %18 = vector.broadcast %cst_13 : f32 to vector<32x256xf32>
    %19 = arith.mulf %18, %15 : vector<32x256xf32>
    %20 = arith.select %17, %15, %19 : vector<32x256xi1>, vector<32x256xf32>
    %c0_14 = arith.constant 0 : index
    %c0_15 = arith.constant 0 : index
    %21 = vector.load %arg6[%c0_14, %c0_15] : memref<1x32xf32, #tpu.memory_space<vmem>>, vector<1x32xf32>
    %c0_16 = arith.constant 0 : index
    %c0_17 = arith.constant 0 : index
    %22 = vector.load %arg7[%c0_16, %c0_17] : memref<1x1xf32, #tpu.memory_space<vmem>>, vector<1x1xf32>
    %cst_18 = arith.constant dense<0.000000e+00> : vector<1x256xf32>
    %23 = tpu.matmul %21, %20, %cst_18 {dimension_numbers = #tpu.dot_dimension_numbers<[1], [0], [0], [1], [0, 0, 1, 1], [], []>} : vector<1x32xf32>, vector<32x256xf32>, vector<1x256xf32> -> vector<1x256xf32>
    %24 = vector.broadcast %22 : vector<1x1xf32> to vector<1x256xf32>
    %25 = arith.addf %23, %24 : vector<1x256xf32>
    %26 = arith.negf %25 : vector<1x256xf32>
    %27 = math.exp %26 : vector<1x256xf32>
    %cst_19 = arith.constant 1.000000e+00 : f32
    %28 = vector.broadcast %cst_19 : f32 to vector<1x256xf32>
    %29 = arith.addf %28, %27 : vector<1x256xf32>
    %30 = arith.divf %28, %29 : vector<1x256xf32>
    %cst_20 = arith.constant 1.000000e+00 : f32
    %31 = vector.broadcast %cst_20 : f32 to vector<1x256xf32>
    %32 = arith.mulf %30, %31 : vector<1x256xf32>
    %c0_21 = arith.constant 0 : index
    %c0_22 = arith.constant 0 : index
    %33 = vector.load %arg8[%c0_21, %c0_22] : memref<1x256xf32, #tpu.memory_space<vmem>>, vector<1x256xf32>
    tpu.vector_store %arg8[%c0_21, %c0_22], %32 {strides = array<i32>} : memref<1x256xf32, #tpu.memory_space<vmem>>, vector<1x256xf32>,
    return
  }
  func.func @transform_0(%arg0: i32) -> (i32, i32) {
    %c0_i32 = arith.constant 0 : i32
    %c0_i32_0 = arith.constant 0 : i32
    return %arg0, %c0_i32 : i32, i32
  }
  func.func @transform_1(%arg0: i32) -> (i32, i32) {
    %c0_i32 = arith.constant 0 : i32
    %c0_i32_0 = arith.constant 0 : i32
    %c0_i32_1 = arith.constant 0 : i32
    return %c0_i32, %c0_i32_0 : i32, i32
  }
  func.func @transform_2(%arg0: i32) -> (i32, i32) {
    %c0_i32 = arith.constant 0 : i32
    %c0_i32_0 = arith.constant 0 : i32
    %c0_i32_1 = arith.constant 0 : i32
    return %c0_i32, %c0_i32_0 : i32, i32
  }
  func.func @transform_3(%arg0: i32) -> (i32, i32) {
    %c0_i32 = arith.constant 0 : i32
    %c0_i32_0 = arith.constant 0 : i32
    %c0_i32_1 = arith.constant 0 : i32
    return %c0_i32, %c0_i32_0 : i32, i32
  }
  func.func @transform_4(%arg0: i32) -> (i32, i32) {
    %c0_i32 = arith.constant 0 : i32
    %c0_i32_0 = arith.constant 0 : i32
    %c0_i32_1 = arith.constant 0 : i32
    return %c0_i32, %c0_i32_0 : i32, i32
  }
  func.func @transform_5(%arg0: i32) -> (i32, i32) {
    %c0_i32 = arith.constant 0 : i32
    %c0_i32_0 = arith.constant 0 : i32
    %c0_i32_1 = arith.constant 0 : i32
    return %c0_i32, %c0_i32_0 : i32, i32
  }
  func.func @transform_6(%arg0: i32) -> (i32, i32) {
    %c0_i32 = arith.constant 0 : i32
    %c0_i32_0 = arith.constant 0 : i32
    %c0_i32_1 = arith.constant 0 : i32
    return %c0_i32, %c0_i32_0 : i32, i32
  }
  func.func @transform_7(%arg0: i32) -> (i32, i32) {
    %c0_i32 = arith.constant 0 : i32
    %c0_i32_0 = arith.constant 0 : i32
    return %c0_i32, %arg0 : i32, i32
  }
}

</mosaic_0001>

<bundles_post_ra>
// kernel: tpu_custom_call.1
= control target key start
LH: loop header
LB: loop body
LE: loop exit
PB: predicated region body
PF: predicated region fallthrough
CT: control target
= control target key end

     0   :  { %s1414_s0 = inlined_call_operand.vmem [shape: f32[1000,16], index: 0, kind: input, shape index: {}]   ;;  %s1415_s1 = inlined_call_operand.vmem [shape: f32[32,16], index: 1, kind: input, shape index: {}]   ;;  %s1416_s2 = inlined_call_operand.vmem [shape: f32[32,1], index: 2, kind: input, shape index: {}]   ;;  %s1417_s3 = inlined_call_operand.vmem [shape: f32[32,32], index: 3, kind: input, shape index: {}]   ;;  %s1418_s4 = inlined_call_operand.vmem [shape: f32[32,1], index: 4, kind: input, shape index: {}]   ;;  %s1419_s5 = inlined_call_operand.vmem [shape: f32[1,32], index: 5, kind: input, shape index: {}]   ;;  %s1420_s6 = inlined_call_operand.<no memory space> [shape: f32[1,1], index: 6, kind: input, shape index: {}]   ;;  %s1421_s7 = inlined_call_operand.hbm [shape: f32[1,1000], index: 7, kind: output, shape index: {}]  }
   0x1   :  { %v12_v0 = vstv %s1420_s6 }
   0x2   :  { %13 = vst [vmem:[#allocation2] sm:$0x1] %v12_v0 }
   0x3   :  { %14 = vsyncpa [#allocation4], 0 }
   0x4   :  { %16 = vsyncpa [#allocation4 + $0x1], 0  ;;  %s1189_s26 = smov 0   ;;  %s1191_s27 = smov 0  }
   0x5   :  { %s1193_s28 = smov 0   ;;  %s1195_s29 = smov 0  }
   0x6 LB: > { %s931_s6 = sadd.s32 4294967295, %s1140_s29   ;;  %s932_s30 = sadd.s32 4294967294, %s1140_s29   ;;  %s1140_s29 = sphi %s1195_s29, %s1427_s29   ;;  %s1136_s28 = sphi %s1193_s28, %s1426_s28   ;;  %s1132_s27 = sphi %s1191_s27, %s1425_s27   ;;  %s1128_s26 = sphi %s1189_s26, %s1424_s26  }
   0x7   : > { %s1212_s8 = sadd.s32 1, %s1140_s29   ;;  %s181_s9 = sadd.s32 1, %s1136_s28 }
   0x8   : > { %s178_s10 = ssub.s32 %s1140_s29, %s1212_s8  ;;  %p191_p0 = scmp.ne.s32.totalorder %s1136_s28, %s1132_s27 }
   0x9   : > { %p179_p1 = scmp.eq.s32.totalorder %s178_s10, 0  ;;  %p192_p2 = scmp.eq.s32.totalorder %s931_s6, 3 }
   0xa   : > { %p197_p3 = scmp.ne.s32.totalorder %s1132_s27, %s1128_s26  ;;  %p198_p4 = scmp.eq.s32.totalorder %s932_s30, 3 }
   0xb   : > { %s1222_s11 = scalar_select %p179_p1, %s1136_s28, %s181_s9  }
   0xc   : > { %p1224_p5 = por %p192_p2, %p191_p0  ;;  %p1228_p6 = por %p198_p4, %p197_p3 }
   0xd   : > { %p935_p7 = scmp.ge.s32.totalorder %s1140_s29, 1  ;;  %p251_p8 = scmp.lt.s32.totalorder %s1140_s29, 5 }
   0xf   : > { %p252_p9 = pnand %p935_p7, %p251_p8 }
  0x10   : > { %s1234_s14 = sshll.u32 (!%p252_p9), %s931_s6, 5  ;;  %s284_s24 = sand.u32 (!%p252_p9), 1, %s1132_s27  }
  0x11   : > { %255 = sbr.rel (%p252_p9) target bundleno = 779 (0x30b), region = 48  ;;  %p292_p10 = scmp.lt.s32.totalorder (!%p252_p9), %s1234_s14, 124 }
  0x12   : > { %s936_s25 = sshll.u32 (!%p252_p9), %s284_s24, 1  ;;  %s871_s15 = scalar_lea.hbm (!%p252_p9), %s1421_s7, %s1234_s14 }
  0x13   : > { %s859_s16 = scalar_lea.sflag (!%p252_p9), [#allocation4], %s284_s24  ;;  %s1145_s18 = smov (!%p252_p9), [#allocation3]  }
  0x14   : > { %s1084_s19 = sshll.u32 (!%p252_p9), %s1145_s18, 4  ;;  %s1085_s19 = int_to_ptr.vmem [resolvable:$false] %s1084_s19 }
  0x15   : > { %s1086_s20 = scalar_lea.vmem (!%p252_p9), %s1085_s19, 64 }
  0x16   : > { %vm362_vm0 = vcmask 130048   ;;  %v1239_v1 = vld [vmem:[%s1415_s1] sm:$0xff]  ;;  %v1142_v2 = vmov 0   ;;  %v341_v3 = vld [vmem:[%s1416_s2 + $0x18] sm:$0xff]  ;;  %v339_v4 = vld [vmem:[%s1416_s2 + $0x8] sm:$0xff]  ;;  %s293_s21 = scalar_select %p292_p10, %s1234_s14, 124 }
  0x17   : > { %1020 = vmatprep.mubr.msk.f32.mxu0 %vm362_vm0, %v1239_v1  ;;  %1071 = vset.pattern.permute.xlu1 %v1142_v2  ;;  %v338_v5 = vld [vmem:[%s1416_s2] sm:$0xff]  ;;  %v340_v6 = vld [vmem:[%s1416_s2 + $0x10] sm:$0xff]  ;;  %v591_v11 = vld [vmem:[%s1418_s4 + $0x18] sm:$0xff]  ;;  %v1143_v47 = vmov 0.0   ;;  %vm612_vm9 = vcmask 261120  }
  0x18   : > { %1070 = vset.pattern.permute.xlu0 %v1142_v2  ;;  %349 = vperm.xlu1 %1071, %v339_v4   ;;  %s938_s6 = sshll.u32 %s293_s21, 3  ;;  %v590_v7 = vld [vmem:[%s1418_s4 + $0x10] sm:$0xff]  ;;  %v588_v14 = vld [vmem:[%s1418_s4] sm:$0xff]  ;;  %v589_v15 = vld [vmem:[%s1418_s4 + $0x8] sm:$0xff] }
  0x19   : > { %359 = vperm.xlu0 %1070, %v341_v3   ;;  %s1260_s10 = scalar_lea.vmem %s1414_s0, %s938_s6  ;;  %v739_v18 = vld [vmem:[#allocation2] sm:$0x1]  ;;  %v335_v44 = vld [vmem:[%s1415_s1 + $0x8] sm:$0xff]  ;;  %v336_v45 = vld [vmem:[%s1415_s1 + $0x10] sm:$0xff]  ;;  %689 = vmatprep.mubr.f32.mxu1 %v1143_v47  ;;  %s286_s6 = scalar_lea.vmem [#allocation3], %s936_s25 }
  0x1a   : > { %v333_v8 = vld [vmem:[%s1260_s10 + $0xf8] sm:$0xff]  ;;  %v332_v10 = vld [vmem:[%s1260_s10 + $0xf0] sm:$0xff]  ;;  %v331_v13 = vld [vmem:[%s1260_s10 + $0xe8] sm:$0xff]  ;;  %s873_s30 = sshll.u32 %s286_s6, 4  ;;  %s874_s30 = int_to_ptr.vmem [resolvable:$true] %s873_s30 }
  0x1b   : > { %v317_v9 = vld [vmem:[%s1260_s10 + $0x78] sm:$0xff]  ;;  %988 = vmatprep.subr.msk.mxu0 %vm362_vm0, %v333_v8  ;;  %v316_v12 = vld [vmem:[%s1260_s10 + $0x70] sm:$0xff]  ;;  %v315_v16 = vld [vmem:[%s1260_s10 + $0x68] sm:$0xff]  ;;  %s1080_s17 = scalar_lea.vmem %s874_s30, 32  ;;  %p1087_p0 = scmp.lt.s32.totalorder %s874_s30, %s1085_s19 }
  0x1c   : > { %344 = vperm.xlu1 %1071, %v338_v5   ;;  %989 = vmatpush3.xpose.msk.msra.mxu0 %vm362_vm0, %v317_v9  ;;  %v330_v17 = vld [vmem:[%s1260_s10 + $0xe0] sm:$0xff]  ;;  %v329_v20 = vld [vmem:[%s1260_s10 + $0xd8] sm:$0xff]  ;;  %v328_v22 = vld [vmem:[%s1260_s10 + $0xd0] sm:$0xff]  ;;  %p1081_p11 = scmp.ne.s32.totalorder %s874_s30, %s1080_s17  ;;  %p1088_p1 = scmp.lt.s32.totalorder %s1086_s20, %s1080_s17 }
  0x1d   : > { %354 = vperm.xlu0 %1070, %v340_v6   ;;  %990 = vmatprep.subr.msk.mxu0 %vm362_vm0, %v332_v10  ;;  %v314_v19 = vld [vmem:[%s1260_s10 + $0x60] sm:$0xff]  ;;  %v313_v21 = vld [vmem:[%s1260_s10 + $0x58] sm:$0xff]  ;;  %v312_v23 = vld [vmem:[%s1260_s10 + $0x50] sm:$0xff] }
  0x1e   : > { %v327_v24 = vld [vmem:[%s1260_s10 + $0xc8] sm:$0xff]  ;;  %v326_v26 = vld [vmem:[%s1260_s10 + $0xc0] sm:$0xff]  ;;  %v325_v28 = vld [vmem:[%s1260_s10 + $0xb8] sm:$0xff]  ;;  %p1082_p12 = pnand %p1081_p11, %p1224_p5  ;;  %p1089_p2 = por %p1088_p1, %p1087_p0 }
  0x1f   : > { %v311_v25 = vld [vmem:[%s1260_s10 + $0x48] sm:$0xff]  ;;  %v310_v27 = vld [vmem:[%s1260_s10 + $0x40] sm:$0xff]  ;;  %v309_v29 = vld [vmem:[%s1260_s10 + $0x38] sm:$0xff] }
  0x20   : > { %604 = vperm.xlu1 %1071, %v590_v7   ;;  %991 = vmatpush3.xpose.msk.msra.mxu0 %vm362_vm0, %v316_v12  ;;  %v324_v30 = vld [vmem:[%s1260_s10 + $0xb0] sm:$0xff]  ;;  %v323_v32 = vld [vmem:[%s1260_s10 + $0xa8] sm:$0xff]  ;;  %v322_v34 = vld [vmem:[%s1260_s10 + $0xa0] sm:$0xff]  ;;  %p1083_p13 = pneg %p1082_p12 }
  0x21   : > { %609 = vperm.xlu0 %1070, %v591_v11   ;;  %992 = vmatprep.subr.msk.mxu0 %vm362_vm0, %v331_v13  ;;  %v308_v31 = vld [vmem:[%s1260_s10 + $0x30] sm:$0xff]  ;;  %v307_v33 = vld [vmem:[%s1260_s10 + $0x28] sm:$0xff]  ;;  %v306_v35 = vld [vmem:[%s1260_s10 + $0x20] sm:$0xff] }
  0x22   : > { %v321_v36 = vld [vmem:[%s1260_s10 + $0x98] sm:$0xff]  ;;  %v320_v38 = vld [vmem:[%s1260_s10 + $0x90] sm:$0xff]  ;;  %v319_v40 = vld [vmem:[%s1260_s10 + $0x88] sm:$0xff]  ;;  %p1090_p3 = pnand %p1089_p2, %p1083_p13 }
  0x23   : > { %v305_v37 = vld [vmem:[%s1260_s10 + $0x18] sm:$0xff]  ;;  %v304_v39 = vld [vmem:[%s1260_s10 + $0x10] sm:$0xff]  ;;  %v303_v41 = vld [vmem:[%s1260_s10 + $0x8] sm:$0xff] }
  0x24   : > { %594 = vperm.xlu1 %1071, %v588_v14   ;;  %993 = vmatpush3.xpose.msk.msra.mxu0 %vm362_vm0, %v315_v16  ;;  %v318_v42 = vld [vmem:[%s1260_s10 + $0x80] sm:$0xff]  ;;  %v337_v46 = vld [vmem:[%s1415_s1 + $0x18] sm:$0xff] }
  0x25   : > { %599 = vperm.xlu0 %1070, %v589_v15   ;;  %994 = vmatprep.subr.msk.mxu0 %vm362_vm0, %v330_v17  ;;  %v302_v43 = vld [vmem:[%s1260_s10] sm:$0xff] }
  0x28   : > { %995 = vmatpush3.xpose.msk.msra.mxu0 %vm362_vm0, %v314_v19  ;;  %v584_v19 = vld [vmem:[%s1417_s3] sm:$0xff] }
  0x29   : > { %742 = vperm.xlu0 %1070, %v739_v18   ;;  %996 = vmatprep.subr.msk.mxu0 %vm362_vm0, %v329_v20 }
  0x2c   : > { %997 = vmatpush3.xpose.msk.msra.mxu0 %vm362_vm0, %v313_v21  ;;  %v585_v21 = vld [vmem:[%s1417_s3 + $0x8] sm:$0xff] }
  0x2d   : > { %998 = vmatprep.subr.msk.mxu0 %vm362_vm0, %v328_v22  ;;  %v586_v22 = vld [vmem:[%s1417_s3 + $0x10] sm:$0xff] }
  0x30   : > { %999 = vmatpush3.xpose.msk.msra.mxu0 %vm362_vm0, %v312_v23  ;;  %v587_v23 = vld [vmem:[%s1417_s3 + $0x18] sm:$0xff] }
  0x31   : > { %1000 = vmatprep.subr.msk.mxu0 %vm362_vm0, %v327_v24 }
  0x34   : > { %1001 = vmatpush3.xpose.msk.msra.mxu0 %vm362_vm0, %v311_v25 }
  0x35   : > { %1002 = vmatprep.subr.msk.mxu0 %vm362_vm0, %v326_v26 }
  0x38   : > { %1003 = vmatpush3.xpose.msk.msra.mxu0 %vm362_vm0, %v310_v27 }
  0x39   : > { %1004 = vmatprep.subr.msk.mxu0 %vm362_vm0, %v325_v28 }
  0x3c   : > { %1005 = vmatpush3.xpose.msk.msra.mxu0 %vm362_vm0, %v309_v29 }
  0x3d   : > { %1006 = vmatprep.subr.msk.mxu0 %vm362_vm0, %v324_v30 }
  0x40   : > { %1007 = vmatpush3.xpose.msk.msra.mxu0 %vm362_vm0, %v308_v31 }
  0x41   : > { %1008 = vmatprep.subr.msk.mxu0 %vm362_vm0, %v323_v32 }
  0x44   : > { %1009 = vmatpush3.xpose.msk.msra.mxu0 %vm362_vm0, %v307_v33 }
  0x45   : > { %1010 = vmatprep.subr.msk.mxu0 %vm362_vm0, %v322_v34 }
  0x48   : > { %1011 = vmatpush3.xpose.msk.msra.mxu0 %vm362_vm0, %v306_v35 }
  0x49   : > { %1012 = vmatprep.subr.msk.mxu0 %vm362_vm0, %v321_v36 }
  0x4c   : > { %1013 = vmatpush3.xpose.msk.msra.mxu0 %vm362_vm0, %v305_v37 }
  0x4d   : > { %1014 = vmatprep.subr.msk.mxu0 %vm362_vm0, %v320_v38 }
  0x50   : > { %1015 = vmatpush3.xpose.msk.msra.mxu0 %vm362_vm0, %v304_v39 }
  0x51   : > { %1016 = vmatprep.subr.msk.mxu0 %vm362_vm0, %v319_v40 }
  0x54   : > { %1017 = vmatpush3.xpose.msk.msra.mxu0 %vm362_vm0, %v303_v41 }
  0x55   : > { %1018 = vmatprep.subr.msk.mxu0 %vm362_vm0, %v318_v42 }
  0x58   : > { %1019 = vmatpush3.xpose.msk.msra.mxu0 %vm362_vm0, %v302_v43 }
  0x5b   : > { %1021 = vmatmul.mubr.msk.f32.vlgmr.msra.gmra.mxu0 %vm362_vm0, %v1239_v1 }
  0x5c   : > { %1022 = vmatprep.mubr.msk.f32.mxu0 %vm362_vm0, %v335_v44 }
  0x5f   : > { %1023 = vmatmul.mubr.msk.f32.gmra.mxu0 %vm362_vm0, %v335_v44 }
  0x60   : > { %1024 = vmatprep.mubr.msk.f32.mxu0 %vm362_vm0, %v336_v45 }
  0x63   : > { %1025 = vmatmul.mubr.msk.f32.gmra.mxu0 %vm362_vm0, %v336_v45 }
  0x64   : > { %1026 = vmatprep.mubr.msk.f32.mxu0 %vm362_vm0, %v337_v46 }
  0x67   : > { %1027 = vmatmul.mubr.msk.f32.gmra.mxu0 %vm362_vm0, %v337_v46 }
  0x93   : > { %v350_v54 = vpop.permute.xlu1 %349 }
  0x94   : > { %v360_v51 = vpop.permute.xlu0 %359 }
  0x97   : > { %v345_v62 = vpop.permute.xlu1 %344 }
  0x98   : > { %v355_v56 = vpop.permute.xlu0 %354 }
  0x9b   : > { %v605_v30 = vpop.permute.xlu1 %604 }
  0x9c   : > { %v610_v28 = vpop.permute.xlu0 %609 }
  0x9f   : > { %v595_v38 = vpop.permute.xlu1 %594 }
  0xa0   : > { %v600_v35 = vpop.permute.xlu0 %599 }
 0x11b   : > { %v537_v48 = vpop.f32.mrf.mxu0 }
 0x11c   : > { %v538_v6 = vadd.f32 %v537_v48, %v345_v62 }
 0x11d   : > { %v539_v49 = vpop.f32.mrf.mxu0 }
 0x11e   : > { %v540_v1 = vadd.f32 %v539_v49, %v345_v62  ;;  %v568_v14 = vmul.f32 0.01, %v538_v6  ;;  %vm560_vm8 = vcmp.gt.f32.partialorder %v538_v6, 0.0 }
 0x11f   : > { %v543_v50 = vpop.f32.mrf.mxu0 }
 0x120   : > { %v544_v2 = vadd.f32 %v543_v50, %v350_v54  ;;  %v569_v12 = vmul.f32 0.01, %v540_v1  ;;  %vm561_vm7 = vcmp.gt.f32.partialorder %v540_v1, 0.0  ;;  %v576_v20 = vsel %vm560_vm8, %v538_v6, %v568_v14 }
 0x121   : > { %v545_v52 = vpop.f32.mrf.mxu0 }
 0x122   : > { %v546_v63 = vadd.f32 %v545_v52, %v350_v54  ;;  %v570_v10 = vmul.f32 0.01, %v544_v2  ;;  %vm562_vm6 = vcmp.gt.f32.partialorder %v544_v2, 0.0  ;;  %v577_v18 = vsel %vm561_vm7, %v540_v1, %v569_v12 }
 0x123   : > { %v549_v53 = vpop.f32.mrf.mxu0  ;;  %v1144_v12 = vmov 1966171168  }
 0x124   : > { %v550_v60 = vadd.f32 %v549_v53, %v355_v56  ;;  %v571_v8 = vmul.f32 0.01, %v546_v63  ;;  %vm563_vm5 = vcmp.gt.f32.partialorder %v546_v63, 0.0  ;;  %v578_v17 = vsel %vm562_vm6, %v544_v2, %v570_v10 }
 0x125   : > { %v551_v55 = vpop.f32.mrf.mxu0 }
 0x126   : > { %v552_v58 = vadd.f32 %v551_v55, %v355_v56  ;;  %v572_v7 = vmul.f32 0.01, %v550_v60  ;;  %vm564_vm4 = vcmp.gt.f32.partialorder %v550_v60, 0.0  ;;  %v579_v16 = vsel %vm563_vm5, %v546_v63, %v571_v8 }
 0x127   : > { %v555_v57 = vpop.f32.mrf.mxu0 }
 0x128   : > { %v556_v59 = vadd.f32 %v555_v57, %v360_v51  ;;  %v573_v4 = vmul.f32 0.01, %v552_v58  ;;  %vm565_vm3 = vcmp.gt.f32.partialorder %v552_v58, 0.0  ;;  %v580_v15 = vsel %vm564_vm4, %v550_v60, %v572_v7 }
 0x129   : > { %v557_v61 = vpop.f32.mrf.mxu0 }
 0x12a   : > { %v558_v0 = vadd.f32 %v557_v61, %v360_v51  ;;  %v574_v3 = vmul.f32 0.01, %v556_v59  ;;  %vm566_vm2 = vcmp.gt.f32.partialorder %v556_v59, 0.0  ;;  %v581_v13 = vsel %vm565_vm3, %v552_v58, %v573_v4 }
 0x12b   : > { %v745_v61 = vlaneseq }
 0x12c   : > { %vm567_vm1 = vcmp.gt.f32.partialorder %v558_v0, 0.0  ;;  %v575_v5 = vmul.f32 0.01, %v558_v0  ;;  %v582_v11 = vsel %vm566_vm2, %v556_v59, %v574_v3  ;;  %v738_v59 = vld [vmem:[%s1419_s5] sm:$0x1] }
 0x12d   : > { %v746_v62 = vshrl.u32 %v745_v61, 7  ;;  %vm855_vm2 = vcmp.lt.s32.totalorder %v745_v61, 256 }
 0x12e   : > { %v583_v9 = vsel %vm567_vm1, %v558_v0, %v575_v5  ;;  %v743_v0 = vpop.permute.xlu0 %742 }
 0x12f   : > { %649 = vmatprep.subr.mxu1 %v583_v9  ;;  %v747_v63 = vsub.s32 0, %v746_v62 }
 0x130   : > { %650 = vmatpush1.msra.mxu1 %v582_v11 }
 0x131   : > { %651 = vmatprep.subr.mxu1 %v581_v13  ;;  %v748_v1 = vrot.slane %v743_v0, %v747_v63  ;;  %v839_v13 = vunpack.c.l.s4 %v1144_v12 }
 0x132   : > { %652 = vmatpush1.msra.mxu1 %v580_v15 }
 0x133   : > { %653 = vmatprep.subr.mxu1 %v579_v16  ;;  %v840_v14 = vunpack.c.0.s8 %v839_v13 }
 0x134   : > { %654 = vmatpush1.msra.mxu1 %v578_v17 }
 0x135   : > { %655 = vmatprep.subr.mxu1 %v577_v18  ;;  %v843_v16 = vsub.s32 %v840_v14, %v746_v62 }
 0x136   : > { %656 = vmatpush1.msra.mxu1 %v576_v20 }
 0x137   : > { %975 = vmatmul.mubr.msk.f32.vlgmr.msra.gmra.mxu1 %vm612_vm9, %v584_v19 }
 0x138   : > { %695 = vmatprep.mubr.f32.mxu1 %v1143_v47 }
 0x13b   : > { %976 = vmatmul.mubr.msk.f32.gmra.mxu1 %vm612_vm9, %v585_v21 }
 0x13c   : > { %701 = vmatprep.mubr.f32.mxu1 %v1143_v47 }
 0x13f   : > { %977 = vmatmul.mubr.msk.f32.gmra.mxu1 %vm612_vm9, %v586_v22 }
 0x140   : > { %707 = vmatprep.mubr.f32.mxu1 %v1143_v47 }
 0x143   : > { %978 = vmatmul.mubr.msk.f32.gmra.mxu1 %vm612_vm9, %v587_v23 }
 0x144   : > { %816 = vmatprep.mubr.f32.mxu1 %v1143_v47 }
 0x1f7   : > { %v691_v24 = vpop.f32.mrf.mxu1 }
 0x1f8   : > { %v692_v46 = vadd.f32 %v691_v24, %v595_v38 }
 0x1f9   : > { %v693_v25 = vpop.f32.mrf.mxu1 }
 0x1fa   : > { %v694_v41 = vadd.f32 %v693_v25, %v595_v38  ;;  %v722_v54 = vmul.f32 0.01, %v692_v46  ;;  %vm714_vm1 = vcmp.gt.f32.partialorder %v692_v46, 0.0 }
 0x1fb   : > { %v697_v26 = vpop.f32.mrf.mxu1 }
 0x1fc   : > { %v698_v42 = vadd.f32 %v697_v26, %v600_v35  ;;  %v723_v52 = vmul.f32 0.01, %v694_v41  ;;  %vm715_vm0 = vcmp.gt.f32.partialorder %v694_v41, 0.0  ;;  %v730_v60 = vsel %vm714_vm1, %v692_v46, %v722_v54 }
 0x1fd   : > { %v699_v27 = vpop.f32.mrf.mxu1 }
 0x1fe   : > { %v700_v39 = vadd.f32 %v699_v27, %v600_v35  ;;  %v724_v50 = vmul.f32 0.01, %v698_v42  ;;  %vm716_vm15 = vcmp.gt.f32.partialorder %v698_v42, 0.0  ;;  %v731_v58 = vsel %vm715_vm0, %v694_v41, %v723_v52 }
 0x1ff   : > { %v703_v29 = vpop.f32.mrf.mxu1 }
 0x200   : > { %v704_v36 = vadd.f32 %v703_v29, %v605_v30  ;;  %v725_v48 = vmul.f32 0.01, %v700_v39  ;;  %vm717_vm14 = vcmp.gt.f32.partialorder %v700_v39, 0.0  ;;  %v732_v57 = vsel %vm716_vm15, %v698_v42, %v724_v50 }
 0x201   : > { %v705_v31 = vpop.f32.mrf.mxu1 }
 0x202   : > { %v706_v33 = vadd.f32 %v705_v31, %v605_v30  ;;  %v726_v47 = vmul.f32 0.01, %v704_v36  ;;  %vm718_vm13 = vcmp.gt.f32.partialorder %v704_v36, 0.0  ;;  %v733_v56 = vsel %vm717_vm14, %v700_v39, %v725_v48 }
 0x203   : > { %v709_v32 = vpop.f32.mrf.mxu1 }
 0x204   : > { %v710_v34 = vadd.f32 %v709_v32, %v610_v28  ;;  %v727_v44 = vmul.f32 0.01, %v706_v33  ;;  %vm719_vm12 = vcmp.gt.f32.partialorder %v706_v33, 0.0  ;;  %v734_v55 = vsel %vm718_vm13, %v704_v36, %v726_v47 }
 0x205   : > { %v711_v37 = vpop.f32.mrf.mxu1 }
 0x206   : > { %v712_v40 = vadd.f32 %v711_v37, %v610_v28  ;;  %v728_v43 = vmul.f32 0.01, %v710_v34  ;;  %vm720_vm10 = vcmp.gt.f32.partialorder %v710_v34, 0.0  ;;  %v735_v53 = vsel %vm719_vm12, %v706_v33, %v727_v44 }
 0x208   : > { %v729_v45 = vmul.f32 0.01, %v712_v40  ;;  %vm721_vm11 = vcmp.gt.f32.partialorder %v712_v40, 0.0  ;;  %v736_v51 = vsel %vm720_vm10, %v710_v34, %v728_v43 }
 0x20a   : > { %v737_v49 = vsel %vm721_vm11, %v712_v40, %v729_v45 }
 0x20b   : > { %776 = vmatprep.subr.mxu1 %v737_v49 }
 0x20c   : > { %777 = vmatpush1.msra.mxu1 %v736_v51 }
 0x20d   : > { %778 = vmatprep.subr.mxu1 %v735_v53 }
 0x20e   : > { %779 = vmatpush1.msra.mxu1 %v734_v55 }
 0x20f   : > { %780 = vmatprep.subr.mxu1 %v733_v56 }
 0x210   : > { %781 = vmatpush1.msra.mxu1 %v732_v57 }
 0x211   : > { %782 = vmatprep.subr.mxu1 %v731_v58 }
 0x212   : > { %783 = vmatpush1.msra.mxu1 %v730_v60 }
 0x213   : > { %979 = vmatmul.mubr.msk.f32.vlgmr.msra.gmra.mxu1 %vm612_vm9, %v738_v59 }
 0x2d3   : > { %v818_v2 = vpop.f32.mrf.mxu1 }
 0x2d4   : > { %v819_v3 = vadd.f32 %v818_v2, %v748_v1 }
 0x2d5   : > { %v820_v4 = vpop.f32.mrf.mxu1 }
 0x2d6   : > { %v980_v5 = vmul.f32 -1.442695, %v819_v3  ;;  %v821_v6 = vadd.f32 %v820_v4, %v748_v1 }
 0x2d8   : > { %1072 = vpow2.f32 %v980_v5  ;;  %v981_v7 = vmul.f32 -1.442695, %v821_v6 }
 0x2da   : > { %1074 = vpow2.f32 %v981_v7 }
 0x2e5   : > { %v1073_v8 = vpop.eup %1072 }
 0x2e6   : > { %v829_v9 = vadd.f32 1.0, %v1073_v8 }
 0x2e7   : > { %v1075_v10 = vpop.eup %1074 }
 0x2e8   : > { %v830_v11 = vadd.f32 1.0, %v1075_v10  ;;  %1076 = vrcp.f32 %v829_v9 }
 0x2ea   : > { %1078 = vrcp.f32 %v830_v11 }
 0x2f5   : > { %v1077_v15 = vpop.eup %1076 }
 0x2f7   : > { %v1079_v17 = vpop.eup %1078 }
 0x2f8   : > { %v837_v18 = vcombine.low %v1077_v15, %v1079_v17 }
 0x2fa   : > { %v844_v19 = vrot.slane %v837_v18, %v843_v16 }
 0x2fc   : > { %v851_v20 = vrot.slane %v844_v19, %v843_v16 }
 0x2fe   : > { %857 = vst.msk [vmem:[%s286_s6] sm:$0x3] %vm855_vm2, %v851_v20 }
 0x2ff   : > { %1093 = shalt.err (!%p1090_p3)
}
 0x300   : > { %s1094_s21 = scalar_lea.hbm %s871_s15, 32  ;;  %s1098_s23 = scalar_lea.hbm %s1421_s7, 128 }
 0x301   : > { %p1095_p4 = scmp.ne.s32.totalorder %s871_s15, %s1094_s21  ;;  %p1099_p9 = scmp.lt.s32.totalorder %s871_s15, %s1421_s7 }
 0x302   : > { %p1100_p10 = scmp.lt.s32.totalorder %s1098_s23, %s1094_s21 }
 0x303   : > { %p1096_p7 = pnand %p1095_p4, %p1224_p5 }
 0x304   : > { %p1101_p11 = por %p1100_p10, %p1099_p9 }
 0x305   : > { %p1097_p8 = pneg %p1096_p7 }
 0x307   : > { %p1102_p12 = pnand %p1101_p11, %p1097_p8 }
 0x309   : > { %1105 = shalt.err (!%p1102_p12)
}
 0x30a   : > { %1028 = dma.vmem_to_hbm [thread:$0]  (%p1224_p5), %s874_s30, 32, %s871_s15, %s859_s16  }
 0x30b PF: > { %p1034_p13 = scmp.ge.s32.totalorder %s1140_s29, 2  ;;  %s885_s6 = sand.u32 1, %s1128_s26  }
 0x30c   : > { %s886_s9 = scalar_lea.sflag [#allocation4], %s885_s6 }
 0x30d   : > { %p1031_p0 = pnand %p1034_p13, %p1228_p6 }
 0x30f   : > { %p1032_p1 = pneg %p1031_p0 }
 0x311   : > { %1123 = dma.done.wait (%p1032_p1), %s886_s9, 32  }
 0x312   : > { %1125 = vsyncadd (%p1032_p1), %s886_s9, 4294967264  ;;  %p19_p2 = scmp.ge.s32.totalorder %s1212_s8, 6   ;;  %s1424_s26 = smov %s1132_s27 }
 0x313   : > { %s1425_s27 = smov %s1136_s28  ;;  %s1426_s28 = smov %s1222_s11 }
 0x314   : > { %s1427_s29 = smov %s1212_s8  ;;  %21 = sbr.rel (!%p19_p2) target bundleno = 6 (0x6), region = 83 }
 0x319   :  { %891 = vsyncpa [#allocation4], 1 }
 0x31a   :  { %893 = vsyncpa [#allocation4 + $0x1], 1 }

</bundles_post_ra>
